<compile_context>
chip_gen: v5e
topology: v5e:2x2
jax: 0.10.0
libtpu: 0.0.40
codegen_flags: <defaults>
</compile_context>

<pallas_src>
import jax
import jax.numpy as jnp
from jax import lax
from jax.experimental import pallas as pl
from jax.experimental.pallas import tpu as pltpu


def _make_ce_kernel(B, tb, labels_normalized):
    """Kernel closure over static batch size B, tile size tb, and the flag."""

    def _kernel(preds_ref, labels_ref, out_ref):
        x = preds_ref[...].astype(jnp.float32)        # (tb, C)
        lab = labels_ref[...].astype(jnp.float32)     # (tb, C)

        # numerically-stable logsumexp along the lane (class) axis
        m = jnp.max(x, axis=-1, keepdims=True)                           # (tb, 1)
        lse = jnp.log(jnp.sum(jnp.exp(x - m), axis=-1, keepdims=True))   # (tb, 1)

        labx_sum = jnp.sum(lab * x, axis=-1, keepdims=True)              # (tb, 1)
        if labels_normalized:
            # sum_c(lab) == 1  =>  row_loss = (m + lse) - sum_c(lab * x)
            row_loss = (m + lse) - labx_sum
        else:
            # sum_c(-lab*(x-m-lse)) == (m+lse)*sum_c(lab) - sum_c(lab*x)
            lab_sum = jnp.sum(lab, axis=-1, keepdims=True)               # (tb, 1)
            row_loss = (m + lse) * lab_sum - labx_sum

        # mask rows of the (possibly OOB) last tile — B is a static Python int
        row_idx = pl.program_id(0) * tb + lax.broadcasted_iota(
            jnp.int32, (tb, 1), 0)
        row_loss = jnp.where(row_idx < B, row_loss, 0.0)

        # one lane-dense (8,128) store of this tile's partial sum
        out_ref[...] = jnp.full(out_ref.shape, jnp.sum(row_loss),
                                dtype=jnp.float32)

    return _kernel


def _vmem_limit_bytes():
    """Generation-aware VMEM limit (v7x: 64 MiB/TC, v5e/v6e: 128 MiB)."""
    try:
        cap = int(pltpu.get_tpu_info().vmem_capacity_bytes)
    except Exception:
        cap = 64 << 20  # conservative fallback (v7x-sized)
    # leave headroom for Mosaic internals; never ask for more than 96 MiB
    return int(min(int(cap * 0.75), 96 << 20))


def _choose_tb(B, C, preds_itemsize, labels_itemsize, vmem_limit):
    """Largest batch tile whose real VMEM footprint fits the limit."""
    if B <= 8:
        return B  # block equal to full batch dim is always legal

    c_pad = ((C + 127) // 128) * 128  # lanes pad the class axis to 128
    # per-row VMEM footprint:
    #   2 pipeline buffers per input (lane-padded, native dtype)
    # + ~3 f32 elementwise temporaries (x/lab upcasts, exp(x-m), lab*x)
    per_row = 2 * c_pad * (preds_itemsize + labels_itemsize) + 3 * c_pad * 4
    tb = int(vmem_limit * 0.9) // max(per_row, 1)

    # guarantee >= 2 grid steps (when B permits) so both v7x TensorCores
    # share the 3.2 TB/s HBM stream; one extra step is noise on v5e/v6e.
    half = ((-(-B // 2)) + 15) // 16 * 16
    tb = min(tb, half, B)

    tb = (tb // 16) * 16  # sublane-friendly for f32 and bf16 packing
    return max(tb, 8)


def cross_entropy_loss_one_hot(preds, labels, *, tb=None,
                               labels_normalized=False):
    """preds, labels: (B, C) arrays. Returns scalar f32 loss."""
    B, C = preds.shape
    assert labels.shape == (B, C)

    vmem_limit = _vmem_limit_bytes()
    if tb is None:
        tb = _choose_tb(B, C,
                        jnp.dtype(preds.dtype).itemsize,
                        jnp.dtype(labels.dtype).itemsize,
                        vmem_limit)

    num_tiles = pl.cdiv(B, tb)

    # TODO(synk): for vocab-scale C add a class-chunk grid axis with an online
    # logsumexp instead of requiring a full (tb, C) row per block.

    partials = pl.pallas_call(
        _make_ce_kernel(B, tb, labels_normalized),
        out_shape=jax.ShapeDtypeStruct((num_tiles, 8, 128), jnp.float32),
        grid_spec=pltpu.PrefetchScalarGridSpec(
            num_scalar_prefetch=0,
            grid=(num_tiles,),
            in_specs=[
                pl.BlockSpec((tb, C), lambda i: (i, 0)),
                pl.BlockSpec((tb, C), lambda i: (i, 0)),
            ],
            out_specs=pl.BlockSpec((1, 8, 128), lambda i: (i, 0, 0)),
        ),
        compiler_params=pltpu.CompilerParams(
            dimension_semantics=("parallel",),   # independent tiles -> megacore
            vmem_limit_bytes=vmem_limit,
        ),
    )(preds, labels)

    return jnp.sum(partials[:, 0, 0]) / jnp.float32(B)


def _reference(preds, labels):
    log_sm = jax.nn.log_softmax(preds.astype(jnp.float32), axis=-1)
    return jnp.mean(jnp.sum(-labels.astype(jnp.float32) * log_sm, axis=-1))


if __name__ == "__main__":
    key = jax.random.PRNGKey(0)
    k1, k2, k3, k4, k5, k6 = jax.random.split(key, 6)

    # Case 1: one-hot labels, batch fits a single tile
    B, C = 16, 32
    preds = jax.random.normal(k1, (B, C), dtype=jnp.float32)
    cls = jax.random.randint(k2, (B,), 0, C)
    labels = jax.nn.one_hot(cls, C, dtype=jnp.float32)

    loss = cross_entropy_loss_one_hot(preds, labels)
    jax.block_until_ready(loss)
    ref = _reference(preds, labels)
    assert jnp.allclose(loss, ref, rtol=1e-5, atol=1e-5), (loss, ref)

    # Case 2: soft labels, ragged batch (exercises in-kernel row masking,
    # multi-tile grid, no host-side padding)
    B2, C2 = 52, 32
    preds2 = jax.random.normal(k3, (B2, C2), dtype=jnp.float32)
    labels2 = jax.nn.softmax(
        jax.random.normal(k4, (B2, C2), dtype=jnp.float32), axis=-1)

    loss2 = cross_entropy_loss_one_hot(preds2, labels2)
    jax.block_until_ready(loss2)
    ref2 = _reference(preds2, labels2)
    assert jnp.allclose(loss2, ref2, rtol=1e-5, atol=1e-5), (loss2, ref2)

    # Case 3: normalized-labels fast path (one-hot => sum(lab)==1), ragged
    B3, C3 = 40, 32
    preds3 = jax.random.normal(k5, (B3, C3), dtype=jnp.float32)
    cls3 = jax.random.randint(k6, (B3,), 0, C3)
    labels3 = jax.nn.one_hot(cls3, C3, dtype=jnp.float32)

    loss3 = cross_entropy_loss_one_hot(preds3, labels3, labels_normalized=True)
    jax.block_until_ready(loss3)
    ref3 = _reference(preds3, labels3)
    assert jnp.allclose(loss3, ref3, rtol=1e-5, atol=1e-5), (loss3, ref3)

    print("KERNEL_OK")
</pallas_src>

<mosaic_0001>
module attributes {stable_mosaic.version = 11 : i64} {
  func.func @_kernel(%arg0: i32, %arg1: memref<16x32xf32, #tpu.memory_space<vmem>>, %arg2: memref<16x32xf32, #tpu.memory_space<vmem>>, %arg3: memref<1x8x128xf32, #tpu.memory_space<vmem>>) attributes {dimension_semantics = [#tpu.dimension_semantics<parallel>], iteration_bounds = array<i64: 1>, scalar_prefetch = 0 : i64, scratch_operands = 0 : i64, tpu.core_type = #tpu.core_type<tc>, window_params = [{transform_indices = @transform_0, window_bounds = array<i64: 16, 32>}, {transform_indices = @transform_1, window_bounds = array<i64: 16, 32>}, {transform_indices = @transform_2, window_bounds = array<i64: 1, 8, 128>}]} {
    %c0 = arith.constant 0 : index
    %c0_0 = arith.constant 0 : index
    %0 = vector.load %arg1[%c0, %c0_0] : memref<16x32xf32, #tpu.memory_space<vmem>>, vector<16x32xf32>
    %c0_1 = arith.constant 0 : index
    %c0_2 = arith.constant 0 : index
    %1 = vector.load %arg2[%c0_1, %c0_2] : memref<16x32xf32, #tpu.memory_space<vmem>>, vector<16x32xf32>
    %cst = arith.constant dense<0xFF800000> : vector<16xf32>
    %2 = vector.multi_reduction <maximumf>, %0, %cst [1] : vector<16x32xf32> to vector<16xf32>
    %3 = vector.shape_cast %2 : vector<16xf32> to vector<16x1xf32>
    %4 = vector.broadcast %3 : vector<16x1xf32> to vector<16x32xf32>
    %5 = arith.subf %0, %4 : vector<16x32xf32>
    %6 = math.exp %5 : vector<16x32xf32>
    %cst_3 = arith.constant dense<0.000000e+00> : vector<16xf32>
    %7 = vector.multi_reduction <add>, %6, %cst_3 [1] : vector<16x32xf32> to vector<16xf32>
    %8 = vector.shape_cast %7 : vector<16xf32> to vector<16x1xf32>
    %9 = math.log %8 : vector<16x1xf32>
    %10 = arith.mulf %1, %0 : vector<16x32xf32>
    %cst_4 = arith.constant dense<0.000000e+00> : vector<16xf32>
    %11 = vector.multi_reduction <add>, %10, %cst_4 [1] : vector<16x32xf32> to vector<16xf32>
    %12 = vector.shape_cast %11 : vector<16xf32> to vector<16x1xf32>
    %cst_5 = arith.constant dense<0.000000e+00> : vector<16xf32>
    %13 = vector.multi_reduction <add>, %1, %cst_5 [1] : vector<16x32xf32> to vector<16xf32>
    %14 = vector.shape_cast %13 : vector<16xf32> to vector<16x1xf32>
    %15 = arith.addf %3, %9 : vector<16x1xf32>
    %16 = arith.mulf %15, %14 : vector<16x1xf32>
    %17 = arith.subf %16, %12 : vector<16x1xf32>
    %c16_i32 = arith.constant 16 : i32
    %18 = arith.muli %arg0, %c16_i32 : i32
    %19 = tpu.iota {dimensions = array<i32: 0>} : vector<16x1xi32>
    %20 = vector.broadcast %18 : i32 to vector<16x1xi32>
    %21 = arith.addi %20, %19 : vector<16x1xi32>
    %c16_i32_6 = arith.constant 16 : i32
    %22 = vector.broadcast %c16_i32_6 : i32 to vector<16x1xi32>
    %23 = arith.cmpi slt, %21, %22 : vector<16x1xi32>
    %cst_7 = arith.constant 0.000000e+00 : f32
    %24 = vector.broadcast %cst_7 : f32 to vector<16x1xf32>
    %25 = arith.select %23, %17, %24 : vector<16x1xi1>, vector<16x1xf32>
    %26 = vector.shape_cast %25 : vector<16x1xf32> to vector<1x16x1xf32>
    %cst_8 = arith.constant dense<0.000000e+00> : vector<1xf32>
    %27 = vector.multi_reduction <add>, %26, %cst_8 [1, 2] : vector<1x16x1xf32> to vector<1xf32>
    %28 = vector.shape_cast %27 : vector<1xf32> to vector<1x1x1xf32>
    %29 = vector.extract %28[0, 0, 0] : f32 from vector<1x1x1xf32>
    %30 = vector.broadcast %29 : f32 to vector<1x8x128xf32>
    %c0_9 = arith.constant 0 : index
    %c0_10 = arith.constant 0 : index
    %c0_11 = arith.constant 0 : index
    %31 = vector.load %arg3[%c0_9, %c0_10, %c0_11] : memref<1x8x128xf32, #tpu.memory_space<vmem>>, vector<1x8x128xf32>
    tpu.vector_store %arg3[%c0_9, %c0_10, %c0_11], %30 {strides = array<i32>} : memref<1x8x128xf32, #tpu.memory_space<vmem>>, vector<1x8x128xf32>,
    return
  }
  func.func @transform_0(%arg0: i32) -> (i32, i32) {
    %c0_i32 = arith.constant 0 : i32
    %c0_i32_0 = arith.constant 0 : i32
    return %arg0, %c0_i32 : i32, i32
  }
  func.func @transform_1(%arg0: i32) -> (i32, i32) {
    %c0_i32 = arith.constant 0 : i32
    %c0_i32_0 = arith.constant 0 : i32
    return %arg0, %c0_i32 : i32, i32
  }
  func.func @transform_2(%arg0: i32) -> (i32, i32, i32) {
    %c0_i32 = arith.constant 0 : i32
    %c0_i32_0 = arith.constant 0 : i32
    %c0_i32_1 = arith.constant 0 : i32
    return %arg0, %c0_i32, %c0_i32_0 : i32, i32, i32
  }
}

</mosaic_0001>

<bundles_post_ra>
// kernel: tpu_custom_call.1
= control target key start
LH: loop header
LB: loop body
LE: loop exit
PB: predicated region body
PF: predicated region fallthrough
CT: control target
= control target key end

     0   :  { %7 = vsyncpa [#allocation3], 0  ;;  %s265_s0 = inlined_call_operand.hbm [shape: f32[16,32], index: 0, kind: input, shape index: {}]   ;;  %s266_s1 = inlined_call_operand.hbm [shape: f32[16,32], index: 1, kind: input, shape index: {}]   ;;  %s267_s2 = inlined_call_operand.hbm [shape: f32[1,8,128], index: 2, kind: output, shape index: {}]  }
   0x1   :  { %8 = vsyncpa [#allocation6], 0 }
   0x2   :  { %9 = vsyncpa [#allocation4], 0  ;;  %s14_s11 = sshll.u32 %s265_s0, 4  ;;  %s228_s12 = smov [#allocation2]   ;;  %s15_s11 = int_to_ptr.hbm [resolvable:$true] %s14_s11 }
   0x3   :  { %s16_s13 = sshll.u32 %s228_s12, 4  ;;  %s27_s16 = sshll.u32 %s266_s1, 4  ;;  %s17_s13 = int_to_ptr.vmem [resolvable:$true] %s16_s13  ;;  %s28_s16 = int_to_ptr.hbm [resolvable:$true] %s27_s16 }
   0x4   :  { %s229_s17 = smov 128   ;;  %s230_s18 = smov 8  }
   0x5   :  { %22 = dma.hbm_to_vmem [thread:$0]  %s15_s11, 256, %s17_s13, [#allocation3], %s229_s17, %s229_s17, %s230_s18  }
   0x6   :  { %s231_s19 = smov [#allocation5]  }
   0x7   :  { %s29_s20 = sshll.u32 %s231_s19, 4  ;;  %s30_s20 = int_to_ptr.vmem [resolvable:$true] %s29_s20 }
   0x8   :  { %35 = dma.hbm_to_vmem [thread:$0]  %s28_s16, 256, %s30_s20, [#allocation6], %s229_s17, %s229_s17, %s230_s18  }
   0x9   :  { %222 = dma.done.wait [#allocation3], 256  }
   0xa   :  { %223 = vsyncadd [#allocation3], 4294967040 }
   0xb   :  { %224 = dma.done.wait [#allocation6], 256  }
   0xc   :  { %225 = vsyncadd [#allocation6], 4294967040  ;;  %vm48_vm0 = vcmask 261120   ;;  %v44_v0 = vld [vmem:[#allocation2] sm:$0xff]  ;;  %v45_v2 = vld [vmem:[#allocation2 + $0x8] sm:$0xff]  ;;  %vm102_vm1 = vcmask 7168  }
   0xd   :  { %v49_v1 = vsel %vm48_vm0, %v44_v0, -inf  ;;  %v52_v3 = vsel %vm48_vm0, %v45_v2, -inf  ;;  %v46_v4 = vld [vmem:[#allocation5] sm:$0xff]  ;;  %v47_v8 = vld [vmem:[#allocation5 + $0x8] sm:$0xff]  ;;  %s232_s0 = smov [#allocation7]   ;;  %s124_s23 = sshll.u32 %s267_s2, 4  ;;  %s125_s23 = int_to_ptr.hbm [resolvable:$true] %s124_s23 }
   0xe   :  { %50 = vmax.xlane.f32.xlu0 %v49_v1  ;;  %v79_v5 = vsel %vm48_vm0, %v46_v4, 0.0  ;;  %v71_v6 = vmul.f32 %v46_v4, %v44_v0  ;;  %v82_v9 = vsel %vm48_vm0, %v47_v8, 0.0  ;;  %v72_v20 = vmul.f32 %v47_v8, %v45_v2  ;;  %s122_s1 = sshll.u32 %s232_s0, 4  ;;  %s123_s1 = int_to_ptr.vmem [resolvable:$true] %s122_s1 }
   0xf   :  { %80 = vadd.xlane.f32.xlu2 %v79_v5 }
  0x10   :  { %v73_v7 = vsel %vm48_vm0, %v71_v6, 0.0  ;;  %v76_v21 = vsel %vm48_vm0, %v72_v20, 0.0 }
  0x16   :  { %53 = vmax.xlane.f32.xlu0 %v52_v3 }
  0x17   :  { %83 = vadd.xlane.f32.xlu2 %v82_v9 }
  0x1e   :  { %74 = vadd.xlane.f32.xlu0 %v73_v7 }
  0x81   :  { %v51_v10 = vpop.xlane.xlu0 %50 }
  0x82   :  { %v55_v11 = vsub.f32 %v44_v0, %v51_v10  ;;  %v81_v24 = vpop.xlane.xlu2 %80 }
  0x84   :  { %v57_v12 = vmul.f32 1.442695, %v55_v11 }
  0x86   :  { %142 = vpow2.f32 %v57_v12 }
  0x89   :  { %v54_v13 = vpop.xlane.xlu0 %53 }
  0x8a   :  { %v56_v14 = vsub.f32 %v45_v2, %v54_v13  ;;  %v84_v32 = vpop.xlane.xlu2 %83 }
  0x8c   :  { %v143_v15 = vpop.eup %142  ;;  %v59_v16 = vmul.f32 1.442695, %v56_v14 }
  0x8d   :  { %v61_v17 = vsel %vm48_vm0, %v143_v15, 0.0 }
  0x8e   :  { %144 = vpow2.f32 %v59_v16  ;;  %62 = vadd.xlane.f32.xlu1 %v61_v17 }
  0x91   :  { %v75_v31 = vpop.xlane.xlu0 %74 }
  0x94   :  { %v145_v18 = vpop.eup %144 }
  0x95   :  { %v64_v19 = vsel %vm48_vm0, %v145_v18, 0.0 }
  0x96   :  { %65 = vadd.xlane.f32.xlu1 %v64_v19 }
  0x9e   :  { %77 = vadd.xlane.f32.xlu1 %v76_v21 }
 0x101   :  { %v63_v22 = vpop.xlane.xlu1 %62 }
 0x102   :  { %146 = vlog2.f32 %v63_v22 }
 0x108   :  { %v147_v23 = vpop.eup %146 }
 0x109   :  { %v68_v25 = vmul.f32 0.6931472, %v147_v23  ;;  %v66_v26 = vpop.xlane.xlu1 %65 }
 0x10a   :  { %148 = vlog2.f32 %v66_v26 }
 0x10b   :  { %v85_v27 = vadd.f32 %v68_v25, %v51_v10 }
 0x10d   :  { %v87_v30 = vmul.f32 %v85_v27, %v81_v24 }
 0x10f   :  { %v89_v35 = vsub.f32 %v87_v30, %v75_v31 }
 0x110   :  { %v149_v28 = vpop.eup %148 }
 0x111   :  { %v70_v29 = vmul.f32 0.6931472, %v149_v28  ;;  %v78_v34 = vpop.xlane.xlu1 %77  ;;  %v103_v38 = vsel %vm102_vm1, %v89_v35, 0.0 }
 0x113   :  { %v86_v33 = vadd.f32 %v70_v29, %v54_v13 }
 0x115   :  { %v88_v36 = vmul.f32 %v86_v33, %v84_v32 }
 0x117   :  { %v90_v37 = vsub.f32 %v88_v36, %v78_v34 }
 0x119   :  { %v104_v39 = vsel %vm102_vm1, %v90_v37, 0.0 }
 0x11a   :  { %v105_v40 = vadd.f32 %v104_v39, %v103_v38 }
 0x11c   :  { %106 = vadd.xlane.f32.xlu2 %v105_v40 }
 0x18f   :  { %v107_v41 = vpop.xlane.xlu2 %106 }
 0x190   :  { %v108_v42 = vrot.slane %v107_v41, 4 }
 0x192   :  { %v109_v43 = vadd.f32 %v108_v42, %v107_v41 }
 0x194   :  { %v110_v44 = vrot.slane %v109_v43, 2 }
 0x196   :  { %v111_v45 = vadd.f32 %v110_v44, %v109_v43 }
 0x198   :  { %v112_v46 = vrot.slane %v111_v45, 1 }
 0x19a   :  { %v113_v47 = vadd.f32 %v112_v46, %v111_v45 }
 0x19c   :  { %135 = vpush %v113_v47 }
 0x1cd   :  { %s136_s24 = spop %135 }
 0x1ce   :  { %v115_v48 = vstv %s136_s24 }
 0x1cf   :  { %116 = vst [vmem:[#allocation7] sm:$0xff] %v115_v48 }
 0x1d0   :  { %127 = dma.vmem_to_hbm [thread:$0]  %s123_s1, 128, %s125_s23, [#allocation4]  }
 0x1d1   :  { %226 = dma.done.wait [#allocation4], 128  }
 0x1d2   :  { %227 = vsyncadd [#allocation4], 4294967168 }
 0x1d3   :  { %132 = vsyncpa [#allocation3], 1 }
 0x1d4   :  { %133 = vsyncpa [#allocation6], 1 }
 0x1d5   :  { %134 = vsyncpa [#allocation4], 1 }

</bundles_post_ra>
